<compile_context>
chip_gen: v7x
topology: tpu7x:2x2x1
jax: 0.10.0
libtpu: 0.0.40
codegen_flags: <defaults>
</compile_context>

<pallas_src>
import jax
import jax.numpy as jnp
from jax.experimental import pallas as pl
from jax.experimental.pallas import tpu as pltpu


def _round_up(x: int, m: int) -> int:
    return ((x + m - 1) // m) * m


def _num_tensorcores() -> int:
    """Best-effort count of TensorCores per chip (for 'parallel' grid sharding)."""
    try:
        kind = jax.local_devices()[0].device_kind.lower()
    except Exception:
        return 1
    # v7x has 2 TensorCores/chip; v4/v5p expose megacore. v5e/v6e have 1 TC.
    if "v7" in kind or "v4" in kind or "v5p" in kind:
        return 2
    return 1


def _make_encoder_kernel(n_mlp_layers: int, compute_dtype):
    """Fused kernel: tanh-MLP followed by one fused (lane-padded) linear head."""

    def kernel(*refs):
        # refs layout:
        #   [x,
        #    (W0, b0), (W1, b1), ... (n_mlp_layers pairs),
        #    (W_head, b_head),          # fused means|log_var head, lane-padded
        #    out]
        x_ref = refs[0]
        out_ref = refs[-1]
        idx = 1
        # In-kernel cast (cheap VPU op) instead of a separate wrapper-side
        # XLA cast that would re-read/re-write x in HBM.
        h = x_ref[...].astype(compute_dtype)
        for _ in range(n_mlp_layers):
            w = refs[idx][...]
            b = refs[idx + 1][...]
            idx += 2
            h = jnp.tanh(
                jnp.dot(h, w, preferred_element_type=jnp.float32) + b
            )
            h = h.astype(compute_dtype)
        w = refs[idx][...]
        b = refs[idx + 1][...]
        out = jnp.dot(h, w, preferred_element_type=jnp.float32) + b
        # Store only the real head columns (out_ref is [tb, head_width]);
        # the 128-lane padding exists only for MXU-side compute.
        hw = out_ref.shape[-1]
        out_ref[...] = out[:, :hw].astype(out_ref.dtype)

    return kernel


def init_encoder_params(key, layer_sizes, latent_size, is_uq=True):
    """Deterministic init mimicking nn.Linear defaults (uniform +-1/sqrt(fan_in)).

    Weights are returned already transposed to [in, out], all in float32."""
    params = {"mlp": [], "is_uq": is_uq}
    keys = jax.random.split(key, 2 * (len(layer_sizes) - 1) + 4)
    k = 0
    for in_size, out_size in zip(layer_sizes[:-1], layer_sizes[1:]):
        bound = 1.0 / jnp.sqrt(in_size)
        w = jax.random.uniform(
            keys[k], (in_size, out_size), jnp.float32, -bound, bound
        )
        b = jax.random.uniform(
            keys[k + 1], (1, out_size), jnp.float32, -bound, bound
        )
        k += 2
        params["mlp"].append((w, b))
    in_size = layer_sizes[-1]
    bound = 1.0 / jnp.sqrt(in_size)
    params["means"] = (
        jax.random.uniform(
            keys[k], (in_size, latent_size), jnp.float32, -bound, bound
        ),
        jax.random.uniform(
            keys[k + 1], (1, latent_size), jnp.float32, -bound, bound
        ),
    )
    k += 2
    if is_uq:
        params["log_var"] = (
            jax.random.uniform(
                keys[k], (in_size, latent_size), jnp.float32, -bound, bound
            ),
            jax.random.uniform(
                keys[k + 1], (1, latent_size), jnp.float32, -bound, bound
            ),
        )
    return params


def prepare_encoder_params(params, *, use_bf16=True):
    """One-time parameter preprocessing (hoisted out of the forward pass).

    Fuses the means/log_var heads into a single matmul, pads the head output
    width to a multiple of 128 lanes (MXU-friendly compute), and casts weights
    to the compute dtype. Run this ONCE and reuse the result across calls."""
    is_uq = bool(params["is_uq"])
    compute_dtype = jnp.bfloat16 if use_bf16 else jnp.float32
    latent = int(params["means"][0].shape[1])

    if is_uq:
        w_head = jnp.concatenate(
            [params["means"][0], params["log_var"][0]], axis=1
        )
        b_head = jnp.concatenate(
            [params["means"][1], params["log_var"][1]], axis=1
        )
    else:
        w_head, b_head = params["means"]
    hidden = int(w_head.shape[0])
    head_width = int(w_head.shape[1])
    padded_width = _round_up(max(head_width, 128), 128)
    w_head = jnp.pad(w_head, ((0, 0), (0, padded_width - head_width)))
    b_head = jnp.pad(b_head, ((0, 0), (0, padded_width - head_width)))

    flat = []
    layer_dims = []
    for w, b in params["mlp"]:
        flat += [w.astype(compute_dtype), b.astype(jnp.float32)]
        layer_dims.append((int(w.shape[0]), int(w.shape[1])))
    flat += [w_head.astype(compute_dtype), b_head.astype(jnp.float32)]

    in_dim = layer_dims[0][0] if layer_dims else hidden
    return {
        "flat": tuple(flat),
        "n_mlp": len(params["mlp"]),
        "layer_dims": layer_dims,
        "in_dim": in_dim,
        "hidden": hidden,
        "latent": latent,
        "head_width": head_width,
        "padded_width": padded_width,
        "is_uq": is_uq,
        "compute_dtype": compute_dtype,
    }


def encoder_forward(x, prepared, *, batch_tile=1024):
    """Runs the fused encoder kernel.

    x: [batch, in_dim] float32 (passed to the kernel in f32; cast happens
    inside the kernel). `prepared` is the output of prepare_encoder_params.
    Returns (mu, log_var) if is_uq else mu, both float32."""
    batch, in_dim = x.shape
    assert in_dim == prepared["in_dim"], "input feature dim mismatch"

    flat = prepared["flat"]
    n_mlp = prepared["n_mlp"]
    latent = prepared["latent"]
    head_width = prepared["head_width"]
    padded_width = prepared["padded_width"]
    compute_dtype = prepared["compute_dtype"]

    # --- Batch tile: one big tile per step (amortizes ~0.35us/step pipeline
    # --- overhead). Only split into >=2 steps on chips with 2 TensorCores so
    # --- the "parallel" axis can actually shard; keep tiles 16-aligned (bf16
    # --- sublane packing), 256-aligned when the batch allows (MXU row height).
    tb = min(batch_tile, batch)
    if _num_tensorcores() >= 2 and batch >= 32:
        half = pl.cdiv(batch, 2)
        align = 256 if half % 256 == 0 else 16
        half = _round_up(half, align)
        tb = min(tb, half)
    tb = max(tb, 1)
    grid = (pl.cdiv(batch, tb),)

    # x is tiled over batch; weights/biases are constant across the grid so
    # they are mapped whole into VMEM once (no per-step double-buffering).
    # NOTE: for large hidden dims (~2-4k on v7x's 64 MiB VMEM) the weights
    # should instead be tiled over an extra "arbitrary" grid axis.
    in_specs = [pl.BlockSpec((tb, in_dim), lambda i: (i, 0))]
    for _ in flat:
        in_specs.append(pl.BlockSpec(memory_space=pltpu.MemorySpace.VMEM))

    # Output stores only the real head columns (8x fewer HBM bytes than the
    # 128-lane padded slab); head_width equals the full last dim of out_shape.
    out_shape = jax.ShapeDtypeStruct((batch, head_width), jnp.float32)
    out_specs = pl.BlockSpec((tb, head_width), lambda i: (i, 0))

    # Explicit VMEM budget (resident params + double-buffered x/out tiles +
    # activation slack), clamped to a range safe on v5e/v6e/v7x.
    param_bytes = sum(int(p.size) * p.dtype.itemsize for p in flat)
    tile_bytes = tb * in_dim * 4 + tb * head_width * 4
    max_hidden = max((n for _, n in prepared["layer_dims"]), default=0)
    act_bytes = tb * padded_width * 4 + tb * max_hidden * 4
    vmem_limit = int(
        min(max(2 * (param_bytes + 2 * tile_bytes + act_bytes), 16 << 20),
            48 << 20)
    )

    # Cost hint for XLA scheduling around the custom call.
    flops = 2 * batch * (
        sum(k * n for k, n in prepared["layer_dims"])
        + prepared["hidden"] * padded_width
    )
    transcendentals = batch * sum(n for _, n in prepared["layer_dims"])
    bytes_accessed = (
        batch * in_dim * 4 + param_bytes + batch * head_width * 4
    )

    kernel = _make_encoder_kernel(n_mlp, compute_dtype)

    out = pl.pallas_call(
        kernel,
        out_shape=out_shape,
        grid_spec=pltpu.PrefetchScalarGridSpec(
            num_scalar_prefetch=0,
            grid=grid,
            in_specs=in_specs,
            out_specs=out_specs,
        ),
        compiler_params=pltpu.CompilerParams(
            dimension_semantics=("parallel",),
            vmem_limit_bytes=vmem_limit,
        ),
        cost_estimate=pl.CostEstimate(
            flops=int(flops),
            transcendentals=int(transcendentals),
            bytes_accessed=int(bytes_accessed),
        ),
    )(x, *flat)

    mu = out[:, :latent]
    if prepared["is_uq"]:
        log_var = out[:, latent:latent + latent]
        return mu, log_var
    return mu


def encoder_forward_ref(x, params):
    """Pure-JAX f32 reference of the same forward pass (for checking)."""
    h = x
    for w, b in params["mlp"]:
        h = jnp.tanh(h @ w + b)
    mu = h @ params["means"][0] + params["means"][1]
    if params["is_uq"]:
        log_var = h @ params["log_var"][0] + params["log_var"][1]
        return mu, log_var
    return mu


if __name__ == "__main__":
    layer_sizes = [16, 32, 32]   # input dim 16, two hidden tanh layers of 32
    latent_size = 8
    batch = 256

    key = jax.random.PRNGKey(0)
    pkey, xkey = jax.random.split(key)
    params = init_encoder_params(pkey, layer_sizes, latent_size, is_uq=True)
    x = jax.random.normal(xkey, (batch, layer_sizes[0]), dtype=jnp.float32)

    mu_ref, log_var_ref = encoder_forward_ref(x, params)

    # One-time parameter preparation (hoisted out of the per-call path).
    prep_f32 = prepare_encoder_params(params, use_bf16=False)
    prep_bf16 = prepare_encoder_params(params, use_bf16=True)

    # f32 path: tight check against the pure-JAX reference.
    mu32, lv32 = encoder_forward(x, prep_f32)
    jax.block_until_ready((mu32, lv32))
    assert jnp.allclose(mu32, mu_ref, atol=1e-4), "mu mismatch (f32)"
    assert jnp.allclose(lv32, log_var_ref, atol=1e-4), "log_var mismatch (f32)"

    # bf16-input / f32-accumulate path: relaxed tolerance.
    mu16, lv16 = encoder_forward(x, prep_bf16)
    jax.block_until_ready((mu16, lv16))
    assert jnp.allclose(mu16, mu_ref, atol=5e-2), "mu mismatch (bf16)"
    assert jnp.allclose(lv16, log_var_ref, atol=5e-2), "log_var mismatch (bf16)"

    # is_uq=False branch (single head).
    params_nouq = init_encoder_params(pkey, layer_sizes, latent_size, is_uq=False)
    prep_nouq = prepare_encoder_params(params_nouq, use_bf16=False)
    mu_only = encoder_forward(x, prep_nouq)
    jax.block_until_ready(mu_only)
    mu_only_ref = encoder_forward_ref(x, params_nouq)
    assert jnp.allclose(mu_only, mu_only_ref, atol=1e-4), "mu mismatch (no-uq)"

    print("KERNEL_OK")
</pallas_src>

<mosaic_0001>
module attributes {stable_mosaic.version = 11 : i64} {
  func.func @kernel(%arg0: i32, %arg1: memref<256x16xf32, #tpu.memory_space<vmem>>, %arg2: memref<16x32xf32, #tpu.memory_space<vmem>>, %arg3: memref<1x32xf32, #tpu.memory_space<vmem>>, %arg4: memref<32x32xf32, #tpu.memory_space<vmem>>, %arg5: memref<1x32xf32, #tpu.memory_space<vmem>>, %arg6: memref<32x128xf32, #tpu.memory_space<vmem>>, %arg7: memref<1x128xf32, #tpu.memory_space<vmem>>, %arg8: memref<256x16xf32, #tpu.memory_space<vmem>>) attributes {dimension_semantics = [#tpu.dimension_semantics<parallel>], iteration_bounds = array<i64: 1>, scalar_prefetch = 0 : i64, scratch_operands = 0 : i64, tpu.core_type = #tpu.core_type<tc>, window_params = [{transform_indices = @transform_0, window_bounds = array<i64: 256, 16>}, {pipeline_mode = #tpu.pipeline_mode<synchronous>, transform_indices = @transform_1, window_bounds = array<i64: 16, 32>}, {pipeline_mode = #tpu.pipeline_mode<synchronous>, transform_indices = @transform_2, window_bounds = array<i64: 1, 32>}, {pipeline_mode = #tpu.pipeline_mode<synchronous>, transform_indices = @transform_3, window_bounds = array<i64: 32, 32>}, {pipeline_mode = #tpu.pipeline_mode<synchronous>, transform_indices = @transform_4, window_bounds = array<i64: 1, 32>}, {pipeline_mode = #tpu.pipeline_mode<synchronous>, transform_indices = @transform_5, window_bounds = array<i64: 32, 128>}, {pipeline_mode = #tpu.pipeline_mode<synchronous>, transform_indices = @transform_6, window_bounds = array<i64: 1, 128>}, {transform_indices = @transform_7, window_bounds = array<i64: 256, 16>}]} {
    %c0 = arith.constant 0 : index
    %c0_0 = arith.constant 0 : index
    %0 = vector.load %arg1[%c0, %c0_0] : memref<256x16xf32, #tpu.memory_space<vmem>>, vector<256x16xf32>
    %c0_1 = arith.constant 0 : index
    %c0_2 = arith.constant 0 : index
    %1 = vector.load %arg2[%c0_1, %c0_2] : memref<16x32xf32, #tpu.memory_space<vmem>>, vector<16x32xf32>
    %c0_3 = arith.constant 0 : index
    %c0_4 = arith.constant 0 : index
    %2 = vector.load %arg3[%c0_3, %c0_4] : memref<1x32xf32, #tpu.memory_space<vmem>>, vector<1x32xf32>
    %cst = arith.constant dense<0.000000e+00> : vector<256x32xf32>
    %3 = tpu.matmul %0, %1, %cst {dimension_numbers = #tpu.dot_dimension_numbers<[1], [0], [0], [1], [0, 0, 1, 1], [], []>} : vector<256x16xf32>, vector<16x32xf32>, vector<256x32xf32> -> vector<256x32xf32>
    %4 = vector.broadcast %2 : vector<1x32xf32> to vector<256x32xf32>
    %5 = arith.addf %3, %4 : vector<256x32xf32>
    %6 = math.tanh %5 : vector<256x32xf32>
    %c0_5 = arith.constant 0 : index
    %c0_6 = arith.constant 0 : index
    %7 = vector.load %arg4[%c0_5, %c0_6] : memref<32x32xf32, #tpu.memory_space<vmem>>, vector<32x32xf32>
    %c0_7 = arith.constant 0 : index
    %c0_8 = arith.constant 0 : index
    %8 = vector.load %arg5[%c0_7, %c0_8] : memref<1x32xf32, #tpu.memory_space<vmem>>, vector<1x32xf32>
    %cst_9 = arith.constant dense<0.000000e+00> : vector<256x32xf32>
    %9 = tpu.matmul %6, %7, %cst_9 {dimension_numbers = #tpu.dot_dimension_numbers<[1], [0], [0], [1], [0, 0, 1, 1], [], []>} : vector<256x32xf32>, vector<32x32xf32>, vector<256x32xf32> -> vector<256x32xf32>
    %10 = vector.broadcast %8 : vector<1x32xf32> to vector<256x32xf32>
    %11 = arith.addf %9, %10 : vector<256x32xf32>
    %12 = math.tanh %11 : vector<256x32xf32>
    %c0_10 = arith.constant 0 : index
    %c0_11 = arith.constant 0 : index
    %13 = vector.load %arg6[%c0_10, %c0_11] : memref<32x128xf32, #tpu.memory_space<vmem>>, vector<32x128xf32>
    %c0_12 = arith.constant 0 : index
    %c0_13 = arith.constant 0 : index
    %14 = vector.load %arg7[%c0_12, %c0_13] : memref<1x128xf32, #tpu.memory_space<vmem>>, vector<1x128xf32>
    %cst_14 = arith.constant dense<0.000000e+00> : vector<256x128xf32>
    %15 = tpu.matmul %12, %13, %cst_14 {dimension_numbers = #tpu.dot_dimension_numbers<[1], [0], [0], [1], [0, 0, 1, 1], [], []>} : vector<256x32xf32>, vector<32x128xf32>, vector<256x128xf32> -> vector<256x128xf32>
    %16 = vector.broadcast %14 : vector<1x128xf32> to vector<256x128xf32>
    %17 = arith.addf %15, %16 : vector<256x128xf32>
    %18 = vector.extract_strided_slice %17 {offsets = [0, 0], sizes = [256, 16], strides = [1, 1]} : vector<256x128xf32> to vector<256x16xf32>
    %c0_15 = arith.constant 0 : index
    %c0_16 = arith.constant 0 : index
    %19 = vector.load %arg8[%c0_15, %c0_16] : memref<256x16xf32, #tpu.memory_space<vmem>>, vector<256x16xf32>
    tpu.vector_store %arg8[%c0_15, %c0_16], %18 {strides = array<i32>} : memref<256x16xf32, #tpu.memory_space<vmem>>, vector<256x16xf32>,
    return
  }
  func.func @transform_0(%arg0: i32) -> (i32, i32) {
    %c0_i32 = arith.constant 0 : i32
    %c0_i32_0 = arith.constant 0 : i32
    return %arg0, %c0_i32 : i32, i32
  }
  func.func @transform_1(%arg0: i32) -> (i32, i32) {
    %c0_i32 = arith.constant 0 : i32
    %c0_i32_0 = arith.constant 0 : i32
    %c0_i32_1 = arith.constant 0 : i32
    return %c0_i32, %c0_i32_0 : i32, i32
  }
  func.func @transform_2(%arg0: i32) -> (i32, i32) {
    %c0_i32 = arith.constant 0 : i32
    %c0_i32_0 = arith.constant 0 : i32
    %c0_i32_1 = arith.constant 0 : i32
    return %c0_i32, %c0_i32_0 : i32, i32
  }
  func.func @transform_3(%arg0: i32) -> (i32, i32) {
    %c0_i32 = arith.constant 0 : i32
    %c0_i32_0 = arith.constant 0 : i32
    %c0_i32_1 = arith.constant 0 : i32
    return %c0_i32, %c0_i32_0 : i32, i32
  }
  func.func @transform_4(%arg0: i32) -> (i32, i32) {
    %c0_i32 = arith.constant 0 : i32
    %c0_i32_0 = arith.constant 0 : i32
    %c0_i32_1 = arith.constant 0 : i32
    return %c0_i32, %c0_i32_0 : i32, i32
  }
  func.func @transform_5(%arg0: i32) -> (i32, i32) {
    %c0_i32 = arith.constant 0 : i32
    %c0_i32_0 = arith.constant 0 : i32
    %c0_i32_1 = arith.constant 0 : i32
    return %c0_i32, %c0_i32_0 : i32, i32
  }
  func.func @transform_6(%arg0: i32) -> (i32, i32) {
    %c0_i32 = arith.constant 0 : i32
    %c0_i32_0 = arith.constant 0 : i32
    %c0_i32_1 = arith.constant 0 : i32
    return %c0_i32, %c0_i32_0 : i32, i32
  }
  func.func @transform_7(%arg0: i32) -> (i32, i32) {
    %c0_i32 = arith.constant 0 : i32
    %c0_i32_0 = arith.constant 0 : i32
    return %arg0, %c0_i32 : i32, i32
  }
}

</mosaic_0001>

<bundles_post_ra>
// kernel: tpu_custom_call.1
= control target key start
LH: loop header
LB: loop body
LE: loop exit
PB: predicated region body
PF: predicated region fallthrough
CT: control target
= control target key end

     0   :  { %vm67_vm0 = vcmask 130048   ;;  %vm432_vm1 = vcmask 261120   ;;  %s2216_s1 = inlined_call_operand.vmem [shape: f32[16,32], index: 1, kind: input, shape index: {}]   ;;  %s2217_s0 = inlined_call_operand.vmem [shape: f32[256,16], index: 0, kind: input, shape index: {}]   ;;  %s2218_s3 = inlined_call_operand.vmem [shape: f32[32,32], index: 3, kind: input, shape index: {}]   ;;  %s2219_s5 = inlined_call_operand.vmem [shape: f32[32,128], index: 5, kind: input, shape index: {}]   ;;  %s2220_s2 = inlined_call_operand.vmem [shape: f32[1,32], index: 2, kind: input, shape index: {}]   ;;  %s2221_s4 = inlined_call_operand.vmem [shape: f32[1,32], index: 4, kind: input, shape index: {}]   ;;  %s2222_s6 = inlined_call_operand.vmem [shape: f32[1,128], index: 6, kind: input, shape index: {}]   ;;  %s2223_s7 = inlined_call_operand.vmem [shape: f32[256,16], index: 7, kind: output, shape index: {}]  }
   0x1   :  { %v58_v0 = vld [vmem:[%s2216_s1] sm:$0xff]  ;;  %v59_v1 = vld [vmem:[%s2216_s1 + $0x8] sm:$0xff]  ;;  %v28_v5 = vld [vmem:[%s2217_s0 + $0x10] sm:$0xff] }
   0x2   :  { %v26_v2 = vld [vmem:[%s2217_s0] sm:$0xff]  ;;  %v1523_v3 = vpack.c.bf16 %v59_v1, %v58_v0  ;;  %v27_v4 = vld [vmem:[%s2217_s0 + $0x8] sm:$0xff]  ;;  %v44_v8 = vld [vmem:[%s2217_s0 + $0x90] sm:$0xff] }
   0x3   :  { %1363 = vmatprep.mubr.msk.f32.mxu0 %vm67_vm0, %v26_v2  ;;  %v42_v6 = vld [vmem:[%s2217_s0 + $0x80] sm:$0xff]  ;;  %v43_v7 = vld [vmem:[%s2217_s0 + $0x88] sm:$0xff]  ;;  %v29_v9 = vld [vmem:[%s2217_s0 + $0x18] sm:$0xff] }
   0x4   :  { %1524 = vmatprep.subr.bf16.mxu0 %v1523_v3  ;;  %1543 = vmatprep.subr.bf16.mxu1 %v1523_v3  ;;  %v30_v10 = vld [vmem:[%s2217_s0 + $0x20] sm:$0xff]  ;;  %v45_v11 = vld [vmem:[%s2217_s0 + $0x98] sm:$0xff]  ;;  %v422_v14 = vld [vmem:[%s2218_s3 + $0x8] sm:$0xff] }
   0x5   :  { %1526 = vmatpush3.bf16.msra.mxu0 %v1523_v3  ;;  %1544 = vmatpush3.bf16.msra.mxu1 %v1523_v3  ;;  %v46_v12 = vld [vmem:[%s2217_s0 + $0xa0] sm:$0xff]  ;;  %v31_v15 = vld [vmem:[%s2217_s0 + $0x28] sm:$0xff]  ;;  %v423_v17 = vld [vmem:[%s2218_s3 + $0x10] sm:$0xff] }
   0x6   :  { %1387 = vmatprep.mubr.msk.f32.mxu1 %vm67_vm0, %v42_v6  ;;  %v421_v13 = vld [vmem:[%s2218_s3] sm:$0xff]  ;;  %v424_v18 = vld [vmem:[%s2218_s3 + $0x18] sm:$0xff]  ;;  %v32_v19 = vld [vmem:[%s2217_s0 + $0x30] sm:$0xff] }
   0x7   :  { %v1527_v16 = vpack.c.bf16 %v422_v14, %v421_v13  ;;  %v47_v20 = vld [vmem:[%s2217_s0 + $0xa8] sm:$0xff]  ;;  %v1531_v21 = vpack.c.bf16 %v424_v18, %v423_v17  ;;  %v48_v22 = vld [vmem:[%s2217_s0 + $0xb0] sm:$0xff]  ;;  %v33_v23 = vld [vmem:[%s2217_s0 + $0x38] sm:$0xff] }
   0x8   :  { %1364 = vmatmul.mubr.msk.f32.vlgmr.msra.gmra.mrb[0].mxu0 %vm67_vm0, %v27_v4  ;;  %1388 = vmatmul.mubr.msk.f32.vlgmr.msra.gmra.mrb[0].mxu1 %vm67_vm0, %v43_v7  ;;  %v34_v24 = vld [vmem:[%s2217_s0 + $0x40] sm:$0xff]  ;;  %v49_v25 = vld [vmem:[%s2217_s0 + $0xb8] sm:$0xff]  ;;  %v35_v27 = vld [vmem:[%s2217_s0 + $0x48] sm:$0xff] }
   0x9   :  { %1366 = vmatprep.mubr.msk.f32.mxu0 %vm67_vm0, %v28_v5  ;;  %1390 = vmatprep.mubr.msk.f32.mxu1 %vm67_vm0, %v44_v8  ;;  %v50_v26 = vld [vmem:[%s2217_s0 + $0xc0] sm:$0xff]  ;;  %v36_v28 = vld [vmem:[%s2217_s0 + $0x50] sm:$0xff]  ;;  %v51_v29 = vld [vmem:[%s2217_s0 + $0xc8] sm:$0xff] }
   0xa   :  { %1528 = vmatprep.subr.bf16.mxu1 %v1527_v16  ;;  %v52_v30 = vld [vmem:[%s2217_s0 + $0xd0] sm:$0xff]  ;;  %v37_v31 = vld [vmem:[%s2217_s0 + $0x58] sm:$0xff]  ;;  %v38_v32 = vld [vmem:[%s2217_s0 + $0x60] sm:$0xff] }
   0xb   :  { %1530 = vmatpush3.bf16.msra.mxu1 %v1527_v16  ;;  %v53_v33 = vld [vmem:[%s2217_s0 + $0xd8] sm:$0xff]  ;;  %v54_v34 = vld [vmem:[%s2217_s0 + $0xe0] sm:$0xff]  ;;  %v39_v35 = vld [vmem:[%s2217_s0 + $0x68] sm:$0xff] }
   0xc   :  { %1367 = vmatmul.mubr.msk.f32.gmra.mrb[2].mxu0 %vm67_vm0, %v29_v9  ;;  %1391 = vmatmul.mubr.msk.f32.gmra.mrb[2].mxu1 %vm67_vm0, %v45_v11  ;;  %v40_v36 = vld [vmem:[%s2217_s0 + $0x70] sm:$0xff]  ;;  %v55_v37 = vld [vmem:[%s2217_s0 + $0xe8] sm:$0xff]  ;;  %v41_v39 = vld [vmem:[%s2217_s0 + $0x78] sm:$0xff] }
   0xd   :  { %1369 = vmatprep.mubr.msk.f32.mxu0 %vm67_vm0, %v30_v10  ;;  %1393 = vmatprep.mubr.msk.f32.mxu1 %vm67_vm0, %v46_v12  ;;  %v56_v38 = vld [vmem:[%s2217_s0 + $0xf0] sm:$0xff]  ;;  %v57_v40 = vld [vmem:[%s2217_s0 + $0xf8] sm:$0xff]  ;;  %v786_v41 = vld [vmem:[%s2219_s5] sm:$0xff] }
   0xe   :  { %1532 = vmatprep.subr.bf16.mxu1 %v1531_v21  ;;  %v787_v42 = vld [vmem:[%s2219_s5 + $0x8] sm:$0xff]  ;;  %v788_v43 = vld [vmem:[%s2219_s5 + $0x10] sm:$0xff]  ;;  %v789_v45 = vld [vmem:[%s2219_s5 + $0x18] sm:$0xff] }
   0xf   :  { %1534 = vmatpush3.bf16.msra.mxu1 %v1531_v21  ;;  %v1535_v44 = vpack.c.bf16 %v787_v42, %v786_v41  ;;  %v1539_v46 = vpack.c.bf16 %v789_v45, %v788_v43  ;;  %v1874_v47 = vld [vmem:[%s2220_s2] ss:$0 sm:$0xff] }
  0x10   :  { %1370 = vmatmul.mubr.msk.f32.gmra.mrb[4].mxu0 %vm67_vm0, %v31_v15  ;;  %1394 = vmatmul.mubr.msk.f32.gmra.mrb[4].mxu1 %vm67_vm0, %v47_v20 }
  0x11   :  { %1372 = vmatprep.mubr.msk.f32.mxu0 %vm67_vm0, %v32_v19  ;;  %1396 = vmatprep.mubr.msk.f32.mxu1 %vm67_vm0, %v48_v22 }
  0x12   :  { %1536 = vmatprep.subr.bf16.mxu0 %v1535_v44 }
  0x13   :  { %1538 = vmatpush3.bf16.msra.mxu0 %v1535_v44 }
  0x14   :  { %1373 = vmatmul.mubr.msk.f32.gmra.mrb[6].mxu0 %vm67_vm0, %v33_v23  ;;  %1397 = vmatmul.mubr.msk.f32.gmra.mrb[6].mxu1 %vm67_vm0, %v49_v25 }
  0x15   :  { %1375 = vmatprep.mubr.msk.f32.mxu0 %vm67_vm0, %v34_v24  ;;  %1399 = vmatprep.mubr.msk.f32.mxu1 %vm67_vm0, %v50_v26 }
  0x16   :  { %1540 = vmatprep.subr.bf16.mxu0 %v1539_v46 }
  0x17   :  { %1542 = vmatpush3.bf16.msra.mxu0 %v1539_v46 }
  0x18   :  { %1376 = vmatmul.mubr.msk.f32.gmra.mrb[8].mxu0 %vm67_vm0, %v35_v27  ;;  %1400 = vmatmul.mubr.msk.f32.gmra.mrb[8].mxu1 %vm67_vm0, %v51_v29 }
  0x19   :  { %1378 = vmatprep.mubr.msk.f32.mxu0 %vm67_vm0, %v36_v28  ;;  %1402 = vmatprep.mubr.msk.f32.mxu1 %vm67_vm0, %v52_v30 }
  0x1c   :  { %1379 = vmatmul.mubr.msk.f32.gmra.mrb[10].mxu0 %vm67_vm0, %v37_v31  ;;  %1403 = vmatmul.mubr.msk.f32.gmra.mrb[10].mxu1 %vm67_vm0, %v53_v33 }
  0x1d   :  { %1381 = vmatprep.mubr.msk.f32.mxu0 %vm67_vm0, %v38_v32  ;;  %1405 = vmatprep.mubr.msk.f32.mxu1 %vm67_vm0, %v54_v34 }
  0x20   :  { %1382 = vmatmul.mubr.msk.f32.gmra.mrb[12].mxu0 %vm67_vm0, %v39_v35  ;;  %1406 = vmatmul.mubr.msk.f32.gmra.mrb[12].mxu1 %vm67_vm0, %v55_v37 }
  0x21   :  { %1384 = vmatprep.mubr.msk.f32.mxu0 %vm67_vm0, %v40_v36  ;;  %1408 = vmatprep.mubr.msk.f32.mxu1 %vm67_vm0, %v56_v38 }
  0x24   :  { %1385 = vmatmul.mubr.msk.f32.gmra.mrb[14].mxu0 %vm67_vm0, %v41_v39  ;;  %1409 = vmatmul.mubr.msk.f32.gmra.mrb[14].mxu1 %vm67_vm0, %v57_v40 }
  0xdb   :  { %v1365_v48 = vpop.f32.mrb[0].mxu0  ;;  %v1877_v51 = vpop.f32.mrb[0].mxu1 }
  0xdc   :  { %v236_v49 = vadd.f32 %v1365_v48, %v1874_v47  ;;  %v230_v50 = vpop.f32.mrb[1].mxu0  ;;  %v1880_v53 = vpop.f32.mrb[1].mxu1  ;;  %v316_v44 = vadd.f32 %v1877_v51, %v1874_v47 }
  0xdd   :  { %v231_v52 = vadd.f32 %v1874_v47, %v230_v50  ;;  %v311_v34 = vadd.f32 %v1874_v47, %v1880_v53 }
  0xdf   :  { %1545 = vtanh.f32 %v231_v52  ;;  %v1368_v54 = vpop.f32.mrb[2].mxu0  ;;  %v1883_v57 = vpop.f32.mrb[2].mxu1 }
  0xe0   :  { %1547 = vtanh.f32 %v236_v49  ;;  %v246_v55 = vadd.f32 %v1368_v54, %v1874_v47  ;;  %v240_v56 = vpop.f32.mrb[3].mxu0  ;;  %v1886_v59 = vpop.f32.mrb[3].mxu1  ;;  %v326_v49 = vadd.f32 %v1883_v57, %v1874_v47 }
  0xe1   :  { %v241_v58 = vadd.f32 %v1874_v47, %v240_v56  ;;  %v321_v43 = vadd.f32 %v1874_v47, %v1886_v59 }
  0xe3   :  { %1549 = vtanh.f32 %v241_v58  ;;  %v1371_v60 = vpop.f32.mrb[4].mxu0  ;;  %v1889_v63 = vpop.f32.mrb[4].mxu1 }
  0xe4   :  { %1551 = vtanh.f32 %v246_v55  ;;  %v256_v61 = vadd.f32 %v1371_v60, %v1874_v47  ;;  %v250_v62 = vpop.f32.mrb[5].mxu0  ;;  %v1892_v1 = vpop.f32.mrb[5].mxu1  ;;  %v336_v54 = vadd.f32 %v1889_v63, %v1874_v47 }
  0xe5   :  { %v251_v0 = vadd.f32 %v1874_v47, %v250_v62  ;;  %v331_v48 = vadd.f32 %v1874_v47, %v1892_v1 }
  0xe7   :  { %1553 = vtanh.f32 %v251_v0  ;;  %v1374_v2 = vpop.f32.mrb[6].mxu0  ;;  %v1895_v5 = vpop.f32.mrb[6].mxu1 }
  0xe8   :  { %1555 = vtanh.f32 %v256_v61  ;;  %v266_v3 = vadd.f32 %v1374_v2, %v1874_v47  ;;  %v260_v4 = vpop.f32.mrb[7].mxu0  ;;  %v1898_v8 = vpop.f32.mrb[7].mxu1  ;;  %v346_v58 = vadd.f32 %v1895_v5, %v1874_v47 }
  0xe9   :  { %v1546_v6 = vpop.eup %1545  ;;  %v261_v7 = vadd.f32 %v1874_v47, %v260_v4  ;;  %v341_v51 = vadd.f32 %v1874_v47, %v1898_v8 }
  0xea   :  { %v1548_v9 = vpop.eup %1547  ;;  %1419 = vmatprep.mubr.msk.f32.mxu1 %vm432_vm1, %v1546_v6 }
  0xeb   :  { %1557 = vtanh.f32 %v261_v7  ;;  %v1377_v10 = vpop.f32.mrb[8].mxu0  ;;  %1420 = vmatmul.mubr.msk.f32.vlgmr.msra.gmra.mrb[16].mxu1 %vm432_vm1, %v1548_v9  ;;  %v1903_v13 = vpop.f32.mrb[8].mxu1 }
  0xec   :  { %1559 = vtanh.f32 %v266_v3  ;;  %v276_v11 = vadd.f32 %v1377_v10, %v1874_v47  ;;  %v270_v12 = vpop.f32.mrb[9].mxu0  ;;  %v1906_v16 = vpop.f32.mrb[9].mxu1  ;;  %v356_v62 = vadd.f32 %v1903_v13, %v1874_v47 }
  0xed   :  { %v1550_v14 = vpop.eup %1549  ;;  %v271_v15 = vadd.f32 %v1874_v47, %v270_v12  ;;  %v351_v57 = vadd.f32 %v1874_v47, %v1906_v16  ;;  %v1985_v16 = vld [vmem:[%s2221_s4] ss:$0 sm:$0xff] }
  0xee   :  { %v1552_v17 = vpop.eup %1551  ;;  %1422 = vmatprep.mubr.msk.f32.mxu1 %vm432_vm1, %v1550_v14 }
  0xef   :  { %1561 = vtanh.f32 %v271_v15  ;;  %v1380_v18 = vpop.f32.mrb[10].mxu0  ;;  %1423 = vmatmul.mubr.msk.f32.gmra.mrb[18].mxu1 %vm432_vm1, %v1552_v17  ;;  %v1911_v21 = vpop.f32.mrb[10].mxu1 }
  0xf0   :  { %1563 = vtanh.f32 %v276_v11  ;;  %v286_v19 = vadd.f32 %v1380_v18, %v1874_v47  ;;  %v280_v20 = vpop.f32.mrb[11].mxu0  ;;  %v1914_v24 = vpop.f32.mrb[11].mxu1  ;;  %v366_v2 = vadd.f32 %v1911_v21, %v1874_v47 }
  0xf1   :  { %v1554_v22 = vpop.eup %1553  ;;  %v281_v23 = vadd.f32 %v1874_v47, %v280_v20  ;;  %v361_v61 = vadd.f32 %v1874_v47, %v1914_v24 }
  0xf2   :  { %v1556_v25 = vpop.eup %1555  ;;  %1425 = vmatprep.mubr.msk.f32.mxu1 %vm432_vm1, %v1554_v22 }
  0xf3   :  { %1565 = vtanh.f32 %v281_v23  ;;  %v1383_v26 = vpop.f32.mrb[12].mxu0  ;;  %1426 = vmatmul.mubr.msk.f32.gmra.mrb[20].mxu1 %vm432_vm1, %v1556_v25  ;;  %v1919_v29 = vpop.f32.mrb[12].mxu1 }
  0xf4   :  { %1567 = vtanh.f32 %v286_v19  ;;  %v296_v27 = vadd.f32 %v1383_v26, %v1874_v47  ;;  %v290_v28 = vpop.f32.mrb[13].mxu0  ;;  %v370_v32 = vpop.f32.mrb[13].mxu1  ;;  %v376_v6 = vadd.f32 %v1919_v29, %v1874_v47 }
  0xf5   :  { %v1558_v30 = vpop.eup %1557  ;;  %v291_v31 = vadd.f32 %v1874_v47, %v290_v28  ;;  %v371_v1 = vadd.f32 %v1874_v47, %v370_v32 }
  0xf6   :  { %v1560_v33 = vpop.eup %1559  ;;  %1428 = vmatprep.mubr.msk.f32.mxu1 %vm432_vm1, %v1558_v30 }
  0xf7   :  { %1569 = vtanh.f32 %v291_v31  ;;  %v1386_v35 = vpop.f32.mrb[14].mxu0  ;;  %1429 = vmatmul.mubr.msk.f32.gmra.mrb[22].mxu1 %vm432_vm1, %v1560_v33  ;;  %v1927_v38 = vpop.f32.mrb[14].mxu1 }
  0xf8   :  { %1571 = vtanh.f32 %v296_v27  ;;  %v306_v36 = vadd.f32 %v1386_v35, %v1874_v47  ;;  %v300_v37 = vpop.f32.mrb[15].mxu0  ;;  %v380_v41 = vpop.f32.mrb[15].mxu1  ;;  %v386_v9 = vadd.f32 %v1927_v38, %v1874_v47 }
  0xf9   :  { %v1562_v39 = vpop.eup %1561  ;;  %v301_v40 = vadd.f32 %v1874_v47, %v300_v37  ;;  %1573 = vtanh.f32 %v311_v34  ;;  %v381_v5 = vadd.f32 %v1874_v47, %v380_v41 }
  0xfa   :  { %v1564_v42 = vpop.eup %1563  ;;  %1431 = vmatprep.mubr.msk.f32.mxu1 %vm432_vm1, %v1562_v39 }
  0xfb   :  { %1575 = vtanh.f32 %v301_v40  ;;  %1432 = vmatmul.mubr.msk.f32.gmra.mrb[24].mxu1 %vm432_vm1, %v1564_v42 }
  0xfc   :  { %1577 = vtanh.f32 %v306_v36 }
  0xfd   :  { %v1566_v45 = vpop.eup %1565  ;;  %1579 = vtanh.f32 %v321_v43 }
  0xfe   :  { %v1568_v46 = vpop.eup %1567  ;;  %1434 = vmatprep.mubr.msk.f32.mxu1 %vm432_vm1, %v1566_v45  ;;  %1581 = vtanh.f32 %v316_v44 }
  0xff   :  { %1435 = vmatmul.mubr.msk.f32.gmra.mrb[26].mxu1 %vm432_vm1, %v1568_v46  ;;  %1583 = vtanh.f32 %v331_v48 }
 0x100   :  { %1585 = vtanh.f32 %v326_v49 }
 0x101   :  { %v1570_v50 = vpop.eup %1569  ;;  %1587 = vtanh.f32 %v341_v51 }
 0x102   :  { %v1572_v52 = vpop.eup %1571  ;;  %1437 = vmatprep.mubr.msk.f32.mxu1 %vm432_vm1, %v1570_v50  ;;  %1589 = vtanh.f32 %v336_v54 }
 0x103   :  { %1438 = vmatmul.mubr.msk.f32.gmra.mrb[28].mxu1 %vm432_vm1, %v1572_v52  ;;  %v1574_v53 = vpop.eup %1573  ;;  %1591 = vtanh.f32 %v351_v57 }
 0x104   :  { %1593 = vtanh.f32 %v346_v58 }
 0x105   :  { %v1576_v55 = vpop.eup %1575  ;;  %1595 = vtanh.f32 %v361_v61 }
 0x106   :  { %v1578_v56 = vpop.eup %1577  ;;  %1440 = vmatprep.mubr.msk.f32.mxu1 %vm432_vm1, %v1576_v55  ;;  %1597 = vtanh.f32 %v356_v62 }
 0x107   :  { %1441 = vmatmul.mubr.msk.f32.gmra.mrb[30].mxu1 %vm432_vm1, %v1578_v56  ;;  %v1580_v59 = vpop.eup %1579  ;;  %1599 = vtanh.f32 %v371_v1 }
 0x108   :  { %1443 = vmatprep.mubr.msk.f32.mxu1 %vm432_vm1, %v1574_v53  ;;  %v1582_v60 = vpop.eup %1581  ;;  %1601 = vtanh.f32 %v366_v2 }
 0x109   :  { %v1584_v63 = vpop.eup %1583  ;;  %1603 = vtanh.f32 %v381_v5 }
 0x10a   :  { %v1586_v0 = vpop.eup %1585  ;;  %1605 = vtanh.f32 %v376_v6 }
 0x10b   :  { %1444 = vmatmul.mubr.msk.f32.gmra.mrb[32].mxu1 %vm432_vm1, %v1582_v60  ;;  %v1588_v3 = vpop.eup %1587  ;;  %1607 = vtanh.f32 %v386_v9 }
 0x10c   :  { %1446 = vmatprep.mubr.msk.f32.mxu1 %vm432_vm1, %v1580_v59  ;;  %v1590_v4 = vpop.eup %1589 }
 0x10d   :  { %v1592_v7 = vpop.eup %1591 }
 0x10e   :  { %v1594_v8 = vpop.eup %1593 }
 0x10f   :  { %1447 = vmatmul.mubr.msk.f32.gmra.mrb[34].mxu1 %vm432_vm1, %v1586_v0  ;;  %v1596_v10 = vpop.eup %1595 }
 0x110   :  { %1449 = vmatprep.mubr.msk.f32.mxu1 %vm432_vm1, %v1584_v63  ;;  %v1598_v11 = vpop.eup %1597 }
 0x111   :  { %v1600_v12 = vpop.eup %1599 }
 0x112   :  { %v1602_v13 = vpop.eup %1601 }
 0x113   :  { %1450 = vmatmul.mubr.msk.f32.gmra.mrb[36].mxu1 %vm432_vm1, %v1590_v4  ;;  %v1604_v14 = vpop.eup %1603 }
 0x114   :  { %1452 = vmatprep.mubr.msk.f32.mxu1 %vm432_vm1, %v1588_v3  ;;  %v1606_v15 = vpop.eup %1605 }
 0x115   :  { %v1608_v47 = vpop.eup %1607 }
 0x117   :  { %1453 = vmatmul.mubr.msk.f32.gmra.mrb[38].mxu1 %vm432_vm1, %v1594_v8 }
 0x118   :  { %1455 = vmatprep.mubr.msk.f32.mxu1 %vm432_vm1, %v1592_v7 }
 0x11b   :  { %1456 = vmatmul.mubr.msk.f32.gmra.mrb[40].mxu1 %vm432_vm1, %v1598_v11 }
 0x11c   :  { %1458 = vmatprep.mubr.msk.f32.mxu1 %vm432_vm1, %v1596_v10 }
 0x11f   :  { %1459 = vmatmul.mubr.msk.f32.gmra.mrb[42].mxu1 %vm432_vm1, %v1602_v13 }
 0x120   :  { %1461 = vmatprep.mubr.msk.f32.mxu1 %vm432_vm1, %v1600_v12 }
 0x123   :  { %1462 = vmatmul.mubr.msk.f32.gmra.mrb[44].mxu1 %vm432_vm1, %v1606_v15 }
 0x124   :  { %1464 = vmatprep.mubr.msk.f32.mxu1 %vm432_vm1, %v1604_v14 }
 0x127   :  { %1465 = vmatmul.mubr.msk.f32.gmra.mrb[46].mxu1 %vm432_vm1, %v1608_v47 }
 0x1be   :  { %v1421_v17 = vpop.f32.mrb[16].mxu1 }
 0x1bf   :  { %v601_v18 = vadd.f32 %v1421_v17, %v1985_v16  ;;  %v595_v19 = vpop.f32.mrb[17].mxu1 }
 0x1c0   :  { %v596_v20 = vadd.f32 %v1985_v16, %v595_v19 }
 0x1c2   :  { %1609 = vtanh.f32 %v596_v20  ;;  %v1424_v21 = vpop.f32.mrb[18].mxu1 }
 0x1c3   :  { %1611 = vtanh.f32 %v601_v18  ;;  %v611_v22 = vadd.f32 %v1424_v21, %v1985_v16  ;;  %v605_v23 = vpop.f32.mrb[19].mxu1 }
 0x1c4   :  { %v606_v24 = vadd.f32 %v1985_v16, %v605_v23 }
 0x1c6   :  { %1613 = vtanh.f32 %v606_v24  ;;  %v1427_v25 = vpop.f32.mrb[20].mxu1 }
 0x1c7   :  { %1615 = vtanh.f32 %v611_v22  ;;  %v621_v26 = vadd.f32 %v1427_v25, %v1985_v16  ;;  %v615_v27 = vpop.f32.mrb[21].mxu1 }
 0x1c8   :  { %v616_v28 = vadd.f32 %v1985_v16, %v615_v27 }
 0x1ca   :  { %1617 = vtanh.f32 %v616_v28  ;;  %v1430_v29 = vpop.f32.mrb[22].mxu1 }
 0x1cb   :  { %1619 = vtanh.f32 %v621_v26  ;;  %v631_v30 = vadd.f32 %v1430_v29, %v1985_v16  ;;  %v625_v31 = vpop.f32.mrb[23].mxu1 }
 0x1cc   :  { %v1610_v32 = vpop.eup %1609  ;;  %v626_v33 = vadd.f32 %v1985_v16, %v625_v31 }
 0x1cd   :  { %v1612_v34 = vpop.eup %1611  ;;  %1475 = vmatprep.mubr.msk.f32.mxu0 %vm432_vm1, %v1610_v32 }
 0x1ce   :  { %1621 = vtanh.f32 %v626_v33  ;;  %v1433_v35 = vpop.f32.mrb[24].mxu1  ;;  %1476 = vmatmul.mubr.msk.f32.vlgmr.msra.gmra.mrb[16].mxu0 %vm432_vm1, %v1612_v34 }
 0x1cf   :  { %1623 = vtanh.f32 %v631_v30  ;;  %v641_v36 = vadd.f32 %v1433_v35, %v1985_v16  ;;  %v635_v37 = vpop.f32.mrb[25].mxu1 }
 0x1d0   :  { %v1614_v38 = vpop.eup %1613  ;;  %v636_v39 = vadd.f32 %v1985_v16, %v635_v37 }
 0x1d1   :  { %v1616_v40 = vpop.eup %1615  ;;  %1478 = vmatprep.mubr.msk.f32.mxu0 %vm432_vm1, %v1614_v38 }
 0x1d2   :  { %1625 = vtanh.f32 %v636_v39  ;;  %v1436_v41 = vpop.f32.mrb[26].mxu1  ;;  %1479 = vmatmul.mubr.msk.f32.gmra.mrb[18].mxu0 %vm432_vm1, %v1616_v40 }
 0x1d3   :  { %1627 = vtanh.f32 %v641_v36  ;;  %v651_v42 = vadd.f32 %v1436_v41, %v1985_v16  ;;  %v645_v43 = vpop.f32.mrb[27].mxu1 }
 0x1d4   :  { %v1618_v44 = vpop.eup %1617  ;;  %v646_v45 = vadd.f32 %v1985_v16, %v645_v43 }
 0x1d5   :  { %v1620_v46 = vpop.eup %1619  ;;  %1481 = vmatprep.mubr.msk.f32.mxu0 %vm432_vm1, %v1618_v44 }
 0x1d6   :  { %1629 = vtanh.f32 %v646_v45  ;;  %v1439_v48 = vpop.f32.mrb[28].mxu1  ;;  %1482 = vmatmul.mubr.msk.f32.gmra.mrb[20].mxu0 %vm432_vm1, %v1620_v46 }
 0x1d7   :  { %1631 = vtanh.f32 %v651_v42  ;;  %v661_v49 = vadd.f32 %v1439_v48, %v1985_v16  ;;  %v655_v50 = vpop.f32.mrb[29].mxu1 }
 0x1d8   :  { %v1622_v52 = vpop.eup %1621  ;;  %v656_v51 = vadd.f32 %v1985_v16, %v655_v50  ;;  %v2054_v50 = vld [vmem:[%s2222_s6] ss:$0 sm:$0xff] }
 0x1d9   :  { %v1624_v53 = vpop.eup %1623  ;;  %1484 = vmatprep.mubr.msk.f32.mxu0 %vm432_vm1, %v1622_v52 }
 0x1da   :  { %1633 = vtanh.f32 %v656_v51  ;;  %v1442_v54 = vpop.f32.mrb[30].mxu1  ;;  %1485 = vmatmul.mubr.msk.f32.gmra.mrb[22].mxu0 %vm432_vm1, %v1624_v53 }
 0x1db   :  { %1635 = vtanh.f32 %v661_v49  ;;  %v671_v55 = vadd.f32 %v1442_v54, %v1985_v16  ;;  %v665_v56 = vpop.f32.mrb[31].mxu1 }
 0x1dc   :  { %v1626_v57 = vpop.eup %1625  ;;  %v666_v58 = vadd.f32 %v1985_v16, %v665_v56 }
 0x1dd   :  { %v1628_v59 = vpop.eup %1627  ;;  %1487 = vmatprep.mubr.msk.f32.mxu0 %vm432_vm1, %v1626_v57 }
 0x1de   :  { %1637 = vtanh.f32 %v666_v58  ;;  %v1445_v60 = vpop.f32.mrb[32].mxu1  ;;  %1488 = vmatmul.mubr.msk.f32.gmra.mrb[24].mxu0 %vm432_vm1, %v1628_v59 }
 0x1df   :  { %1639 = vtanh.f32 %v671_v55  ;;  %v681_v61 = vadd.f32 %v1445_v60, %v1985_v16  ;;  %v675_v62 = vpop.f32.mrb[33].mxu1 }
 0x1e0   :  { %v1630_v63 = vpop.eup %1629  ;;  %v676_v0 = vadd.f32 %v1985_v16, %v675_v62 }
 0x1e1   :  { %v1632_v1 = vpop.eup %1631  ;;  %1490 = vmatprep.mubr.msk.f32.mxu0 %vm432_vm1, %v1630_v63 }
 0x1e2   :  { %1641 = vtanh.f32 %v676_v0  ;;  %v1448_v2 = vpop.f32.mrb[34].mxu1  ;;  %1491 = vmatmul.mubr.msk.f32.gmra.mrb[26].mxu0 %vm432_vm1, %v1632_v1 }
 0x1e3   :  { %1643 = vtanh.f32 %v681_v61  ;;  %v691_v3 = vadd.f32 %v1448_v2, %v1985_v16  ;;  %v685_v4 = vpop.f32.mrb[35].mxu1 }
 0x1e4   :  { %v1634_v5 = vpop.eup %1633  ;;  %v686_v6 = vadd.f32 %v1985_v16, %v685_v4 }
 0x1e5   :  { %v1636_v7 = vpop.eup %1635  ;;  %1493 = vmatprep.mubr.msk.f32.mxu0 %vm432_vm1, %v1634_v5 }
 0x1e6   :  { %1645 = vtanh.f32 %v686_v6  ;;  %v1451_v8 = vpop.f32.mrb[36].mxu1  ;;  %1494 = vmatmul.mubr.msk.f32.gmra.mrb[28].mxu0 %vm432_vm1, %v1636_v7 }
 0x1e7   :  { %1647 = vtanh.f32 %v691_v3  ;;  %v701_v9 = vadd.f32 %v1451_v8, %v1985_v16  ;;  %v695_v10 = vpop.f32.mrb[37].mxu1 }
 0x1e8   :  { %v1638_v11 = vpop.eup %1637  ;;  %v696_v12 = vadd.f32 %v1985_v16, %v695_v10 }
 0x1e9   :  { %v1640_v13 = vpop.eup %1639  ;;  %1496 = vmatprep.mubr.msk.f32.mxu0 %vm432_vm1, %v1638_v11 }
 0x1ea   :  { %1649 = vtanh.f32 %v696_v12  ;;  %v1454_v14 = vpop.f32.mrb[38].mxu1  ;;  %1497 = vmatmul.mubr.msk.f32.gmra.mrb[30].mxu0 %vm432_vm1, %v1640_v13 }
 0x1eb   :  { %1651 = vtanh.f32 %v701_v9  ;;  %v711_v15 = vadd.f32 %v1454_v14, %v1985_v16  ;;  %v705_v47 = vpop.f32.mrb[39].mxu1 }
 0x1ec   :  { %v1642_v17 = vpop.eup %1641  ;;  %v706_v18 = vadd.f32 %v1985_v16, %v705_v47 }
 0x1ed   :  { %v1644_v19 = vpop.eup %1643  ;;  %1499 = vmatprep.mubr.msk.f32.mxu0 %vm432_vm1, %v1642_v17 }
 0x1ee   :  { %1653 = vtanh.f32 %v706_v18  ;;  %v1457_v20 = vpop.f32.mrb[40].mxu1  ;;  %1500 = vmatmul.mubr.msk.f32.gmra.mrb[32].mxu0 %vm432_vm1, %v1644_v19 }
 0x1ef   :  { %1655 = vtanh.f32 %v711_v15  ;;  %v721_v21 = vadd.f32 %v1457_v20, %v1985_v16  ;;  %v715_v22 = vpop.f32.mrb[41].mxu1 }
 0x1f0   :  { %v1646_v23 = vpop.eup %1645  ;;  %v716_v24 = vadd.f32 %v1985_v16, %v715_v22 }
 0x1f1   :  { %v1648_v25 = vpop.eup %1647  ;;  %1502 = vmatprep.mubr.msk.f32.mxu0 %vm432_vm1, %v1646_v23 }
 0x1f2   :  { %1657 = vtanh.f32 %v716_v24  ;;  %v1460_v26 = vpop.f32.mrb[42].mxu1  ;;  %1503 = vmatmul.mubr.msk.f32.gmra.mrb[34].mxu0 %vm432_vm1, %v1648_v25 }
 0x1f3   :  { %1659 = vtanh.f32 %v721_v21  ;;  %v731_v27 = vadd.f32 %v1460_v26, %v1985_v16  ;;  %v725_v28 = vpop.f32.mrb[43].mxu1 }
 0x1f4   :  { %v1650_v29 = vpop.eup %1649  ;;  %v726_v30 = vadd.f32 %v1985_v16, %v725_v28 }
 0x1f5   :  { %v1652_v31 = vpop.eup %1651  ;;  %1505 = vmatprep.mubr.msk.f32.mxu0 %vm432_vm1, %v1650_v29 }
 0x1f6   :  { %1661 = vtanh.f32 %v726_v30  ;;  %v1463_v32 = vpop.f32.mrb[44].mxu1  ;;  %1506 = vmatmul.mubr.msk.f32.gmra.mrb[36].mxu0 %vm432_vm1, %v1652_v31 }
 0x1f7   :  { %1663 = vtanh.f32 %v731_v27  ;;  %v741_v33 = vadd.f32 %v1463_v32, %v1985_v16  ;;  %v735_v34 = vpop.f32.mrb[45].mxu1 }
 0x1f8   :  { %v1654_v35 = vpop.eup %1653  ;;  %v736_v36 = vadd.f32 %v1985_v16, %v735_v34 }
 0x1f9   :  { %v1656_v37 = vpop.eup %1655  ;;  %1508 = vmatprep.mubr.msk.f32.mxu0 %vm432_vm1, %v1654_v35 }
 0x1fa   :  { %1665 = vtanh.f32 %v736_v36  ;;  %v1466_v38 = vpop.f32.mrb[46].mxu1  ;;  %1509 = vmatmul.mubr.msk.f32.gmra.mrb[38].mxu0 %vm432_vm1, %v1656_v37 }
 0x1fb   :  { %1667 = vtanh.f32 %v741_v33  ;;  %v751_v39 = vadd.f32 %v1466_v38, %v1985_v16  ;;  %v745_v40 = vpop.f32.mrb[47].mxu1 }
 0x1fc   :  { %v1658_v41 = vpop.eup %1657  ;;  %v746_v42 = vadd.f32 %v1985_v16, %v745_v40 }
 0x1fd   :  { %v1660_v43 = vpop.eup %1659  ;;  %1511 = vmatprep.mubr.msk.f32.mxu0 %vm432_vm1, %v1658_v41 }
 0x1fe   :  { %1669 = vtanh.f32 %v746_v42  ;;  %1512 = vmatmul.mubr.msk.f32.gmra.mrb[40].mxu0 %vm432_vm1, %v1660_v43 }
 0x1ff   :  { %1671 = vtanh.f32 %v751_v39 }
 0x200   :  { %v1662_v44 = vpop.eup %1661 }
 0x201   :  { %v1664_v45 = vpop.eup %1663  ;;  %1514 = vmatprep.mubr.msk.f32.mxu0 %vm432_vm1, %v1662_v44 }
 0x202   :  { %1515 = vmatmul.mubr.msk.f32.gmra.mrb[42].mxu0 %vm432_vm1, %v1664_v45 }
 0x204   :  { %v1666_v46 = vpop.eup %1665 }
 0x205   :  { %v1668_v48 = vpop.eup %1667  ;;  %1517 = vmatprep.mubr.msk.f32.mxu0 %vm432_vm1, %v1666_v46 }
 0x206   :  { %1518 = vmatmul.mubr.msk.f32.gmra.mrb[44].mxu0 %vm432_vm1, %v1668_v48 }
 0x208   :  { %v1670_v16 = vpop.eup %1669 }
 0x209   :  { %v1672_v49 = vpop.eup %1671  ;;  %1520 = vmatprep.mubr.msk.f32.mxu0 %vm432_vm1, %v1670_v16 }
 0x20a   :  { %1521 = vmatmul.mubr.msk.f32.gmra.mrb[46].mxu0 %vm432_vm1, %v1672_v49 }
 0x2a1   :  { %v1477_v52 = vpop.f32.mrb[16].mxu0 }
 0x2a2   :  { %v965_v51 = vadd.f32 %v1477_v52, %v2054_v50  ;;  %v959_v53 = vpop.f32.mrb[17].mxu0 }
 0x2a3   :  { %v960_v54 = vadd.f32 %v2054_v50, %v959_v53 }
 0x2a4   :  { %1119 = vst.msk [vmem:[%s2223_s7 + $0x8] sm:$0xff] %vm67_vm0, %v965_v51 }
 0x2a5   :  { %1118 = vst.msk [vmem:[%s2223_s7] sm:$0xff] %vm67_vm0, %v960_v54  ;;  %v1480_v55 = vpop.f32.mrb[18].mxu0 }
 0x2a6   :  { %v975_v56 = vadd.f32 %v1480_v55, %v2054_v50  ;;  %v969_v57 = vpop.f32.mrb[19].mxu0 }
 0x2a7   :  { %v970_v58 = vadd.f32 %v2054_v50, %v969_v57 }
 0x2a8   :  { %1121 = vst.msk [vmem:[%s2223_s7 + $0x18] sm:$0xff] %vm67_vm0, %v975_v56 }
 0x2a9   :  { %1120 = vst.msk [vmem:[%s2223_s7 + $0x10] sm:$0xff] %vm67_vm0, %v970_v58  ;;  %v1483_v59 = vpop.f32.mrb[20].mxu0 }
 0x2aa   :  { %v985_v60 = vadd.f32 %v1483_v59, %v2054_v50  ;;  %v979_v61 = vpop.f32.mrb[21].mxu0 }
 0x2ab   :  { %v980_v62 = vadd.f32 %v2054_v50, %v979_v61 }
 0x2ac   :  { %1123 = vst.msk [vmem:[%s2223_s7 + $0x28] sm:$0xff] %vm67_vm0, %v985_v60 }
 0x2ad   :  { %1122 = vst.msk [vmem:[%s2223_s7 + $0x20] sm:$0xff] %vm67_vm0, %v980_v62  ;;  %v1486_v63 = vpop.f32.mrb[22].mxu0 }
 0x2ae   :  { %v995_v0 = vadd.f32 %v1486_v63, %v2054_v50  ;;  %v989_v1 = vpop.f32.mrb[23].mxu0 }
 0x2af   :  { %v990_v2 = vadd.f32 %v2054_v50, %v989_v1 }
 0x2b0   :  { %1125 = vst.msk [vmem:[%s2223_s7 + $0x38] sm:$0xff] %vm67_vm0, %v995_v0 }
 0x2b1   :  { %1124 = vst.msk [vmem:[%s2223_s7 + $0x30] sm:$0xff] %vm67_vm0, %v990_v2  ;;  %v1489_v3 = vpop.f32.mrb[24].mxu0 }
 0x2b2   :  { %v1005_v4 = vadd.f32 %v1489_v3, %v2054_v50  ;;  %v999_v5 = vpop.f32.mrb[25].mxu0 }
 0x2b3   :  { %v1000_v6 = vadd.f32 %v2054_v50, %v999_v5 }
 0x2b4   :  { %1127 = vst.msk [vmem:[%s2223_s7 + $0x48] sm:$0xff] %vm67_vm0, %v1005_v4 }
 0x2b5   :  { %1126 = vst.msk [vmem:[%s2223_s7 + $0x40] sm:$0xff] %vm67_vm0, %v1000_v6  ;;  %v1492_v7 = vpop.f32.mrb[26].mxu0 }
 0x2b6   :  { %v1015_v8 = vadd.f32 %v1492_v7, %v2054_v50  ;;  %v1009_v9 = vpop.f32.mrb[27].mxu0 }
 0x2b7   :  { %v1010_v10 = vadd.f32 %v2054_v50, %v1009_v9 }
 0x2b8   :  { %1129 = vst.msk [vmem:[%s2223_s7 + $0x58] sm:$0xff] %vm67_vm0, %v1015_v8 }
 0x2b9   :  { %1128 = vst.msk [vmem:[%s2223_s7 + $0x50] sm:$0xff] %vm67_vm0, %v1010_v10  ;;  %v1495_v11 = vpop.f32.mrb[28].mxu0 }
 0x2ba   :  { %v1025_v12 = vadd.f32 %v1495_v11, %v2054_v50  ;;  %v1019_v13 = vpop.f32.mrb[29].mxu0 }
 0x2bb   :  { %v1020_v14 = vadd.f32 %v2054_v50, %v1019_v13 }
 0x2bc   :  { %1131 = vst.msk [vmem:[%s2223_s7 + $0x68] sm:$0xff] %vm67_vm0, %v1025_v12 }
 0x2bd   :  { %1130 = vst.msk [vmem:[%s2223_s7 + $0x60] sm:$0xff] %vm67_vm0, %v1020_v14  ;;  %v1498_v15 = vpop.f32.mrb[30].mxu0 }
 0x2be   :  { %v1035_v47 = vadd.f32 %v1498_v15, %v2054_v50  ;;  %v1029_v17 = vpop.f32.mrb[31].mxu0 }
 0x2bf   :  { %v1030_v18 = vadd.f32 %v2054_v50, %v1029_v17 }
 0x2c0   :  { %1133 = vst.msk [vmem:[%s2223_s7 + $0x78] sm:$0xff] %vm67_vm0, %v1035_v47 }
 0x2c1   :  { %1132 = vst.msk [vmem:[%s2223_s7 + $0x70] sm:$0xff] %vm67_vm0, %v1030_v18  ;;  %v1501_v19 = vpop.f32.mrb[32].mxu0 }
 0x2c2   :  { %v1045_v20 = vadd.f32 %v1501_v19, %v2054_v50  ;;  %v1039_v21 = vpop.f32.mrb[33].mxu0 }
 0x2c3   :  { %v1040_v22 = vadd.f32 %v2054_v50, %v1039_v21 }
 0x2c4   :  { %1135 = vst.msk [vmem:[%s2223_s7 + $0x88] sm:$0xff] %vm67_vm0, %v1045_v20 }
 0x2c5   :  { %1134 = vst.msk [vmem:[%s2223_s7 + $0x80] sm:$0xff] %vm67_vm0, %v1040_v22  ;;  %v1504_v23 = vpop.f32.mrb[34].mxu0 }
 0x2c6   :  { %v1055_v24 = vadd.f32 %v1504_v23, %v2054_v50  ;;  %v1049_v25 = vpop.f32.mrb[35].mxu0 }
 0x2c7   :  { %v1050_v26 = vadd.f32 %v2054_v50, %v1049_v25 }
 0x2c8   :  { %1137 = vst.msk [vmem:[%s2223_s7 + $0x98] sm:$0xff] %vm67_vm0, %v1055_v24 }
 0x2c9   :  { %1136 = vst.msk [vmem:[%s2223_s7 + $0x90] sm:$0xff] %vm67_vm0, %v1050_v26  ;;  %v1507_v27 = vpop.f32.mrb[36].mxu0 }
 0x2ca   :  { %v1065_v28 = vadd.f32 %v1507_v27, %v2054_v50  ;;  %v1059_v29 = vpop.f32.mrb[37].mxu0 }
 0x2cb   :  { %v1060_v30 = vadd.f32 %v2054_v50, %v1059_v29 }
 0x2cc   :  { %1139 = vst.msk [vmem:[%s2223_s7 + $0xa8] sm:$0xff] %vm67_vm0, %v1065_v28 }
 0x2cd   :  { %1138 = vst.msk [vmem:[%s2223_s7 + $0xa0] sm:$0xff] %vm67_vm0, %v1060_v30  ;;  %v1510_v31 = vpop.f32.mrb[38].mxu0 }
 0x2ce   :  { %v1075_v32 = vadd.f32 %v1510_v31, %v2054_v50  ;;  %v1069_v33 = vpop.f32.mrb[39].mxu0 }
 0x2cf   :  { %v1070_v34 = vadd.f32 %v2054_v50, %v1069_v33 }
 0x2d0   :  { %1141 = vst.msk [vmem:[%s2223_s7 + $0xb8] sm:$0xff] %vm67_vm0, %v1075_v32 }
 0x2d1   :  { %1140 = vst.msk [vmem:[%s2223_s7 + $0xb0] sm:$0xff] %vm67_vm0, %v1070_v34  ;;  %v1513_v35 = vpop.f32.mrb[40].mxu0 }
 0x2d2   :  { %v1085_v36 = vadd.f32 %v1513_v35, %v2054_v50  ;;  %v1079_v37 = vpop.f32.mrb[41].mxu0 }
 0x2d3   :  { %v1080_v38 = vadd.f32 %v2054_v50, %v1079_v37 }
 0x2d4   :  { %1143 = vst.msk [vmem:[%s2223_s7 + $0xc8] sm:$0xff] %vm67_vm0, %v1085_v36 }
 0x2d5   :  { %1142 = vst.msk [vmem:[%s2223_s7 + $0xc0] sm:$0xff] %vm67_vm0, %v1080_v38  ;;  %v1516_v39 = vpop.f32.mrb[42].mxu0 }
 0x2d6   :  { %v1095_v40 = vadd.f32 %v1516_v39, %v2054_v50  ;;  %v1089_v41 = vpop.f32.mrb[43].mxu0 }
 0x2d7   :  { %v1090_v42 = vadd.f32 %v2054_v50, %v1089_v41 }
 0x2d8   :  { %1145 = vst.msk [vmem:[%s2223_s7 + $0xd8] sm:$0xff] %vm67_vm0, %v1095_v40 }
 0x2d9   :  { %1144 = vst.msk [vmem:[%s2223_s7 + $0xd0] sm:$0xff] %vm67_vm0, %v1090_v42  ;;  %v1519_v43 = vpop.f32.mrb[44].mxu0 }
 0x2da   :  { %v1105_v44 = vadd.f32 %v1519_v43, %v2054_v50  ;;  %v1099_v45 = vpop.f32.mrb[45].mxu0 }
 0x2db   :  { %v1100_v46 = vadd.f32 %v2054_v50, %v1099_v45 }
 0x2dc   :  { %1147 = vst.msk [vmem:[%s2223_s7 + $0xe8] sm:$0xff] %vm67_vm0, %v1105_v44 }
 0x2dd   :  { %1146 = vst.msk [vmem:[%s2223_s7 + $0xe0] sm:$0xff] %vm67_vm0, %v1100_v46  ;;  %v1522_v48 = vpop.f32.mrb[46].mxu0 }
 0x2de   :  { %v1115_v16 = vadd.f32 %v1522_v48, %v2054_v50  ;;  %v1109_v49 = vpop.f32.mrb[47].mxu0 }
 0x2df   :  { %v1110_v52 = vadd.f32 %v2054_v50, %v1109_v49 }
 0x2e0   :  { %1149 = vst.msk [vmem:[%s2223_s7 + $0xf8] sm:$0xff] %vm67_vm0, %v1115_v16 }
 0x2e1   :  { %1148 = vst.msk [vmem:[%s2223_s7 + $0xf0] sm:$0xff] %vm67_vm0, %v1110_v52 }

</bundles_post_ra>
